<compile_context>
chip_gen: v6e
topology: v6e:2x2x1
jax: 0.10.0
libtpu: 0.0.40
codegen_flags: <defaults>
</compile_context>

<pallas_src>
import math
from functools import partial

import jax
import jax.numpy as jnp
from jax.experimental import pallas as pl
from jax.experimental.pallas import tpu as pltpu

_MIN_CHUNK_BYTES = 512 * 1024   # don't split below ~512 KiB per DMA chunk
_MAX_CHUNKS = 8                 # a few large DMAs; >=2 lets both v7x TCs issue work


def _dma_copy_kernel(x_hbm, o_hbm, sem):
    # Whole-chunk HBM -> HBM DMA: no VMEM staging, no vector loads/stores.
    i = pl.program_id(0)
    cp = pltpu.make_async_copy(x_hbm.at[i], o_hbm.at[i], sem)
    cp.start()
    cp.wait()


def _pick_chunks(total, itemsize):
    """Largest power-of-two chunk count (<= _MAX_CHUNKS) that evenly divides
    `total` while keeping each chunk >= _MIN_CHUNK_BYTES."""
    n = 1
    c = 2
    while c <= _MAX_CHUNKS:
        if total % c == 0 and (total // c) * itemsize >= _MIN_CHUNK_BYTES:
            n = c
        c *= 2
    return n


@partial(jax.jit, static_argnames=("shape",))
def _view_impl(x, shape):
    total = math.prod(x.shape)
    trailing = math.prod(shape)
    assert trailing > 0 and total % trailing == 0, "View shape incompatible with input size"
    lead = total // trailing

    itemsize = jnp.dtype(x.dtype).itemsize
    n_chunks = _pick_chunks(total, itemsize)
    chunk = total // n_chunks

    # Metadata-only flatten (row-major, matches torch .view on contiguous input).
    x2d = jnp.reshape(x, (n_chunks, chunk))

    out2d = pl.pallas_call(
        _dma_copy_kernel,
        out_shape=jax.ShapeDtypeStruct((n_chunks, chunk), x.dtype),
        grid=(n_chunks,),
        in_specs=[pl.BlockSpec(memory_space=pl.ANY)],   # raw HBM ref, no auto-DMA
        out_specs=pl.BlockSpec(memory_space=pl.ANY),    # result written directly in HBM
        scratch_shapes=[pltpu.SemaphoreType.DMA(())],
        compiler_params=pltpu.CompilerParams(
            dimension_semantics=("parallel",),          # v7x: both TCs drive DMA issue
        ),
        cost_estimate=pl.CostEstimate(
            flops=0, transcendentals=0, bytes_accessed=2 * total * itemsize),
    )(x2d)

    # Metadata-only reshape to (-1, *shape) — torch .view row-major semantics.
    return jnp.reshape(out2d, (lead,) + tuple(shape))


def pallas_view(x, *shape):
    """Equivalent of torch View(*shape): x.view(-1, *shape)."""
    return _view_impl(x, tuple(shape))


if __name__ == "__main__":
    key = jax.random.PRNGKey(0)
    # Small NCHW input consistent with a YOLO feature map: (N, C, H, W)
    N, C, H, W = 2, 4, 16, 16
    x = jax.random.normal(key, (N, C, H, W), dtype=jnp.float32)

    # View(C*H*W) -> (-1, C*H*W): flatten each sample (typical YOLOv1 head usage).
    out = jax.block_until_ready(pallas_view(x, C * H * W))
    ref = jnp.reshape(x, (-1, C * H * W))
    assert out.shape == (N, C * H * W)
    assert out.dtype == x.dtype
    assert bool(jnp.array_equal(out, ref))

    # Multi-dim target shape as well, e.g. View(C, H, W).
    out2 = jax.block_until_ready(pallas_view(x, C, H, W))
    assert out2.shape == (N, C, H, W)
    assert bool(jnp.array_equal(out2, x))

    # Odd-sized tensor (not a multiple of 128): HBM->HBM DMA has no layout constraint.
    x_odd = jax.random.normal(jax.random.PRNGKey(1), (2, 3, 7, 5), dtype=jnp.float32)
    out3 = jax.block_until_ready(pallas_view(x_odd, 3 * 7 * 5))
    assert out3.shape == (2, 3 * 7 * 5)
    assert bool(jnp.array_equal(out3, jnp.reshape(x_odd, (-1, 3 * 7 * 5))))

    # bf16 feature map large enough to exercise the multi-chunk (parallel DMA) path.
    xb = jax.random.normal(jax.random.PRNGKey(2), (8, 64, 32, 32), dtype=jnp.bfloat16)
    out4 = jax.block_until_ready(pallas_view(xb, 64 * 32 * 32))
    assert out4.shape == (8, 64 * 32 * 32)
    assert out4.dtype == xb.dtype
    assert bool(jnp.array_equal(out4, jnp.reshape(xb, (-1, 64 * 32 * 32))))

    print("KERNEL_OK")
</pallas_src>

<mosaic_0001>
module attributes {stable_mosaic.version = 11 : i64} {
  func.func @_dma_copy_kernel(%arg0: i32, %arg1: memref<1x2048xf32, #tpu.memory_space<any>>, %arg2: memref<1x2048xf32, #tpu.memory_space<any>>, %arg3: memref<!tpu.dma_semaphore, #tpu.memory_space<semaphore_mem>>) attributes {dimension_semantics = [#tpu.dimension_semantics<parallel>], iteration_bounds = array<i64: 1>, scalar_prefetch = 0 : i64, scratch_operands = 1 : i64, tpu.core_type = #tpu.core_type<tc>, window_params = [{}, {}]} {
    %c0_i32 = arith.constant 0 : i32
    %0 = tpu.memref_slice %arg1[%arg0, %c0_i32] : memref<1x2048xf32, #tpu.memory_space<any>> -> memref<1x2048xf32, #tpu.memory_space<any>>
    %1 = tpu.memref_squeeze %0 : memref<1x2048xf32, #tpu.memory_space<any>> -> memref<2048xf32, #tpu.memory_space<any>>
    %c0_i32_0 = arith.constant 0 : i32
    %2 = tpu.memref_slice %arg2[%arg0, %c0_i32_0] : memref<1x2048xf32, #tpu.memory_space<any>> -> memref<1x2048xf32, #tpu.memory_space<any>>
    %3 = tpu.memref_squeeze %2 : memref<1x2048xf32, #tpu.memory_space<any>> -> memref<2048xf32, #tpu.memory_space<any>>
    tpu.enqueue_dma source(%1 : memref<2048xf32, #tpu.memory_space<any>>) target(%3 : memref<2048xf32, #tpu.memory_space<any>>) target_semaphore(%arg3 : memref<!tpu.dma_semaphore, #tpu.memory_space<semaphore_mem>>)
    %c0_i32_1 = arith.constant 0 : i32
    %4 = tpu.memref_slice %arg1[%arg0, %c0_i32_1] : memref<1x2048xf32, #tpu.memory_space<any>> -> memref<1x2048xf32, #tpu.memory_space<any>>
    %5 = tpu.memref_squeeze %4 : memref<1x2048xf32, #tpu.memory_space<any>> -> memref<2048xf32, #tpu.memory_space<any>>
    %c0_i32_2 = arith.constant 0 : i32
    %6 = tpu.memref_slice %arg2[%arg0, %c0_i32_2] : memref<1x2048xf32, #tpu.memory_space<any>> -> memref<1x2048xf32, #tpu.memory_space<any>>
    %7 = tpu.memref_squeeze %6 : memref<1x2048xf32, #tpu.memory_space<any>> -> memref<2048xf32, #tpu.memory_space<any>>
    tpu.wait_dma2 semaphore(%arg3 : memref<!tpu.dma_semaphore, #tpu.memory_space<semaphore_mem>>) src(%5 : memref<2048xf32, #tpu.memory_space<any>>) dst(%7 : memref<2048xf32, #tpu.memory_space<any>>)
    return
  }
}

</mosaic_0001>

<bundles_post_ra>
// kernel: _view_impl.1
= control target key start
LH: loop header
LB: loop body
LE: loop exit
PB: predicated region body
PF: predicated region fallthrough
CT: control target
= control target key end

     0   :  { %s95_s0 = inlined_call_operand.vmem [shape: f32[1,2048], index: 0, kind: input, shape index: {}]   ;;  %s96_s1 = inlined_call_operand.vmem [shape: f32[1,2048], index: 1, kind: output, shape index: {}]  }
   0x1   :  { %v42_v0 = vld [vmem:[%s95_s0] sm:$0xff]  ;;  %v44_v1 = vld [vmem:[%s95_s0 + $0x8] sm:$0xff] }
   0x2   :  { %43 = vst [vmem:[%s96_s1] sm:$0xff] %v42_v0  ;;  %45 = vst [vmem:[%s96_s1 + $0x8] sm:$0xff] %v44_v1 }
   0x3   :  { %53 = vsyncadd [#allocation2], 256 }
   0x4   :  { %71 = dma.done.wait [#allocation2], 256 }
   0x5   :  { %72 = vsyncadd [#allocation2], 4294967040 }
   0x6   :  { %56 = vsyncmov [#allocation2] }
   0x9   :  { %s57_s14 = vpop.sfrf %56 }
   0xa   :  { %p70_p0 = scmp.ne.s32.totalorder %s57_s14, 0 }
   0xc   :  { %61 = shalt.err (%p70_p0)  }

</bundles_post_ra>
